<compile_context>
chip_gen: v5e
topology: v5e:2x2
jax: 0.10.0
libtpu: 0.0.40
codegen_flags: <defaults>
</compile_context>

<pallas_src>
import jax
import jax.numpy as jnp
from jax.experimental import pallas as pl
from jax.experimental.pallas import tpu as pltpu


def _round_up(n: int, m: int) -> int:
    return ((n + m - 1) // m) * m


def mlp_kernel(x_ref, w1_ref, b1_ref, w2_ref, b2_ref, w3_ref, b3_ref, o_ref):
    # Layer 1 -> ReLU (MXU accumulates in f32; bias/ReLU stay on f32 in the VPU).
    h = jnp.dot(x_ref[...], w1_ref[...], preferred_element_type=jnp.float32)
    h = jnp.maximum(h + b1_ref[...].astype(jnp.float32), 0.0)
    # Layer 2 -> ReLU
    h = jnp.dot(h.astype(w2_ref.dtype), w2_ref[...], preferred_element_type=jnp.float32)
    h = jnp.maximum(h + b2_ref[...].astype(jnp.float32), 0.0)
    # Layer 3 (no activation)
    o = jnp.dot(h.astype(w3_ref.dtype), w3_ref[...], preferred_element_type=jnp.float32)
    o_ref[...] = (o + b3_ref[...].astype(jnp.float32)).astype(o_ref.dtype)


def prepare_params(params):
    """One-time padding of parameters for the kernel (call once, reuse every forward).

    Only the hidden dim is zero-padded (to a multiple of 128 lanes); zero K rows / N
    columns contribute nothing numerically.  The input-feature and num_classes dims are
    left at native width so per-call activation reads and output writeback carry no
    padded bytes."""
    w1, b1, w2, b2, w3, b3 = params
    in_f, hid = w1.shape
    out_f = w3.shape[1]
    hid_p = _round_up(hid, 128)
    # TODO(synk): on v6e/v7x with large hidden_size, round the hidden tiles to 256 and
    # use bf16 weights to fill the 256x256 MXU and halve weight DMA; at these sizes 128
    # lanes is already ideal (and exactly right for v5e's 128x128 MXUs).
    w1p = jnp.zeros((in_f, hid_p), w1.dtype).at[:, :hid].set(w1)
    b1p = jnp.zeros((1, hid_p), b1.dtype).at[:, :hid].set(b1)
    w2p = jnp.zeros((hid_p, hid_p), w2.dtype).at[:hid, :hid].set(w2)
    b2p = jnp.zeros((1, hid_p), b2.dtype).at[:, :hid].set(b2)
    w3p = jnp.zeros((hid_p, out_f), w3.dtype).at[:hid, :].set(w3)
    b3p = b3.reshape(1, out_f)
    return (w1p, b1p, w2p, b2p, w3p, b3p)


def _choose_batch_tiling(batch: int, max_tile: int = 512):
    """Pick (tile, padded_batch) such that
       - tile is a multiple of 8 (sublane) and <= max_tile,
       - there are >= 2 grid steps whenever the batch spans more than one sublane tile
         (keeps both v7x TensorCores busy under dimension_semantics=('parallel',)),
       - batch-padding waste is minimized (tile ~= ceil(batch / n_steps))."""
    b8 = _round_up(batch, 8)
    n_steps = max(pl.cdiv(b8, max_tile), 2 if b8 > 8 else 1)
    tile = _round_up(pl.cdiv(b8, n_steps), 8)
    n_steps = pl.cdiv(b8, tile)
    return tile, tile * n_steps


def neural_net_forward(x, padded_params, *, max_batch_tile=512):
    """Fused Linear-ReLU-Linear-ReLU-Linear forward as one pallas_call.

    `padded_params` must come from prepare_params().  Params may be f32 or bf16 on
    v5e/v6e/v7x (bf16 halves weight DMA on all three; accumulation, bias-add and ReLU
    stay in f32 inside the kernel — loosen test tolerances for the bf16 path)."""
    w1p, b1p, w2p, b2p, w3p, b3p = padded_params
    B, in_f = x.shape
    hid_p = w1p.shape[1]
    out_f = w3p.shape[1]

    tile, b_pad = _choose_batch_tiling(B, max_batch_tile)
    xp = x if b_pad == B else jnp.zeros((b_pad, in_f), x.dtype).at[:B].set(x)

    grid = (b_pad // tile,)
    act_itemsize = jnp.dtype(x.dtype).itemsize
    w_itemsize = jnp.dtype(w1p.dtype).itemsize
    weight_bytes = (w1p.size + b1p.size + w2p.size + b2p.size + w3p.size + b3p.size) * w_itemsize

    cost = pl.CostEstimate(
        flops=2 * b_pad * (in_f * hid_p + hid_p * hid_p + hid_p * out_f),
        transcendentals=0,
        bytes_accessed=b_pad * (in_f + out_f) * act_itemsize + weight_bytes,
    )

    # VMEM request derived from the actual block footprint (x/out double-buffered per
    # grid step, weights resident) with headroom; never the full 64 MiB v7x budget.
    block_bytes = 2 * tile * (in_f + out_f) * act_itemsize + 2 * weight_bytes
    vmem_limit = min(48 * 1024 * 1024, max(16 * 1024 * 1024, 2 * block_bytes))

    # TODO(synk): single-buffer the grid-invariant weight/bias blocks with
    # pipeline_mode=pl.Buffered(1) for extra VMEM headroom once hidden_size scales.
    out = pl.pallas_call(
        mlp_kernel,
        out_shape=jax.ShapeDtypeStruct((b_pad, out_f), x.dtype),
        grid_spec=pl.GridSpec(
            grid=grid,
            in_specs=[
                # per-tile activation slice (native feature width, no lane padding)
                pl.BlockSpec((tile, in_f), lambda i: (i, 0)),
                # weights / biases: full grid-invariant blocks, fetched once
                pl.BlockSpec((in_f, hid_p), lambda i: (0, 0)),
                pl.BlockSpec((1, hid_p), lambda i: (0, 0)),
                pl.BlockSpec((hid_p, hid_p), lambda i: (0, 0)),
                pl.BlockSpec((1, hid_p), lambda i: (0, 0)),
                pl.BlockSpec((hid_p, out_f), lambda i: (0, 0)),
                pl.BlockSpec((1, out_f), lambda i: (0, 0)),
            ],
            # native num_classes width: writeback carries no padded bytes
            out_specs=pl.BlockSpec((tile, out_f), lambda i: (i, 0)),
        ),
        compiler_params=pltpu.CompilerParams(
            dimension_semantics=("parallel",),
            vmem_limit_bytes=vmem_limit,
        ),
        cost_estimate=cost,
    )(xp, w1p, b1p, w2p, b2p, w3p, b3p)

    return out if b_pad == B else out[:B]


def init_params(key, input_size, hidden_size, num_classes, dtype=jnp.float32):
    """Deterministic init mirroring nn.Linear shapes.

    torch stores weight as (out, in); we pre-transpose to (in, out) for the kernel.
    bf16 params halve weight DMA on v5e, v6e and v7x alike; the kernel keeps
    accumulation / bias-add / ReLU in f32 regardless of the param dtype."""
    ks = jax.random.split(key, 6)

    def linear(kw, kb, fan_in, fan_out):
        bound = 1.0 / (fan_in ** 0.5)
        w = jax.random.uniform(kw, (fan_in, fan_out), dtype, -bound, bound)
        b = jax.random.uniform(kb, (1, fan_out), dtype, -bound, bound)
        return w, b

    w1, b1 = linear(ks[0], ks[1], input_size, hidden_size)
    w2, b2 = linear(ks[2], ks[3], hidden_size, hidden_size)
    w3, b3 = linear(ks[4], ks[5], hidden_size, num_classes)
    return (w1, b1, w2, b2, w3, b3)


def reference_forward(x, params):
    w1, b1, w2, b2, w3, b3 = params
    h = jnp.maximum(x @ w1 + b1, 0.0)
    h = jnp.maximum(h @ w2 + b2, 0.0)
    return h @ w3 + b3


if __name__ == "__main__":
    input_size, hidden_size, num_classes = 32, 64, 10
    batch = 16

    key = jax.random.PRNGKey(0)
    kx, kp = jax.random.split(key)
    x = jax.random.normal(kx, (batch, input_size), jnp.float32)
    params = init_params(kp, input_size, hidden_size, num_classes)

    padded_params = prepare_params(params)        # one-time padding, outside the forward
    fwd = jax.jit(neural_net_forward)

    out = jax.block_until_ready(fwd(x, padded_params))

    ref = reference_forward(x, params)
    assert out.shape == (batch, num_classes)
    assert jnp.allclose(out, ref, atol=1e-5, rtol=1e-5), "mismatch vs reference"

    print("KERNEL_OK")
</pallas_src>

<mosaic_0001>
module attributes {stable_mosaic.version = 11 : i64} {
  func.func @mlp_kernel(%arg0: i32, %arg1: memref<8x32xf32, #tpu.memory_space<vmem>>, %arg2: memref<32x128xf32, #tpu.memory_space<vmem>>, %arg3: memref<1x128xf32, #tpu.memory_space<vmem>>, %arg4: memref<128x128xf32, #tpu.memory_space<vmem>>, %arg5: memref<1x128xf32, #tpu.memory_space<vmem>>, %arg6: memref<128x10xf32, #tpu.memory_space<vmem>>, %arg7: memref<1x10xf32, #tpu.memory_space<vmem>>, %arg8: memref<8x10xf32, #tpu.memory_space<vmem>>) attributes {dimension_semantics = [#tpu.dimension_semantics<parallel>], iteration_bounds = array<i64: 2>, scalar_prefetch = 0 : i64, scratch_operands = 0 : i64, tpu.core_type = #tpu.core_type<tc>, window_params = [{transform_indices = @transform_0, window_bounds = array<i64: 8, 32>}, {pipeline_mode = #tpu.pipeline_mode<synchronous>, transform_indices = @transform_1, window_bounds = array<i64: 32, 128>}, {pipeline_mode = #tpu.pipeline_mode<synchronous>, transform_indices = @transform_2, window_bounds = array<i64: 1, 128>}, {pipeline_mode = #tpu.pipeline_mode<synchronous>, transform_indices = @transform_3, window_bounds = array<i64: 128, 128>}, {pipeline_mode = #tpu.pipeline_mode<synchronous>, transform_indices = @transform_4, window_bounds = array<i64: 1, 128>}, {pipeline_mode = #tpu.pipeline_mode<synchronous>, transform_indices = @transform_5, window_bounds = array<i64: 128, 10>}, {pipeline_mode = #tpu.pipeline_mode<synchronous>, transform_indices = @transform_6, window_bounds = array<i64: 1, 10>}, {transform_indices = @transform_7, window_bounds = array<i64: 8, 10>}]} {
    %c0 = arith.constant 0 : index
    %c0_0 = arith.constant 0 : index
    %0 = vector.load %arg1[%c0, %c0_0] : memref<8x32xf32, #tpu.memory_space<vmem>>, vector<8x32xf32>
    %c0_1 = arith.constant 0 : index
    %c0_2 = arith.constant 0 : index
    %1 = vector.load %arg2[%c0_1, %c0_2] : memref<32x128xf32, #tpu.memory_space<vmem>>, vector<32x128xf32>
    %cst = arith.constant dense<0.000000e+00> : vector<8x128xf32>
    %2 = tpu.matmul %0, %1, %cst {dimension_numbers = #tpu.dot_dimension_numbers<[1], [0], [0], [1], [0, 0, 1, 1], [], []>} : vector<8x32xf32>, vector<32x128xf32>, vector<8x128xf32> -> vector<8x128xf32>
    %c0_3 = arith.constant 0 : index
    %c0_4 = arith.constant 0 : index
    %3 = vector.load %arg3[%c0_3, %c0_4] : memref<1x128xf32, #tpu.memory_space<vmem>>, vector<1x128xf32>
    %4 = vector.broadcast %3 : vector<1x128xf32> to vector<8x128xf32>
    %5 = arith.addf %2, %4 : vector<8x128xf32>
    %cst_5 = arith.constant 0.000000e+00 : f32
    %6 = vector.broadcast %cst_5 : f32 to vector<8x128xf32>
    %7 = arith.maximumf %5, %6 : vector<8x128xf32>
    %c0_6 = arith.constant 0 : index
    %c0_7 = arith.constant 0 : index
    %8 = vector.load %arg4[%c0_6, %c0_7] : memref<128x128xf32, #tpu.memory_space<vmem>>, vector<128x128xf32>
    %cst_8 = arith.constant dense<0.000000e+00> : vector<8x128xf32>
    %9 = tpu.matmul %7, %8, %cst_8 {dimension_numbers = #tpu.dot_dimension_numbers<[1], [0], [0], [1], [0, 0, 1, 1], [], []>} : vector<8x128xf32>, vector<128x128xf32>, vector<8x128xf32> -> vector<8x128xf32>
    %c0_9 = arith.constant 0 : index
    %c0_10 = arith.constant 0 : index
    %10 = vector.load %arg5[%c0_9, %c0_10] : memref<1x128xf32, #tpu.memory_space<vmem>>, vector<1x128xf32>
    %11 = vector.broadcast %10 : vector<1x128xf32> to vector<8x128xf32>
    %12 = arith.addf %9, %11 : vector<8x128xf32>
    %cst_11 = arith.constant 0.000000e+00 : f32
    %13 = vector.broadcast %cst_11 : f32 to vector<8x128xf32>
    %14 = arith.maximumf %12, %13 : vector<8x128xf32>
    %c0_12 = arith.constant 0 : index
    %c0_13 = arith.constant 0 : index
    %15 = vector.load %arg6[%c0_12, %c0_13] : memref<128x10xf32, #tpu.memory_space<vmem>>, vector<128x10xf32>
    %cst_14 = arith.constant dense<0.000000e+00> : vector<8x10xf32>
    %16 = tpu.matmul %14, %15, %cst_14 {dimension_numbers = #tpu.dot_dimension_numbers<[1], [0], [0], [1], [0, 0, 1, 1], [], []>} : vector<8x128xf32>, vector<128x10xf32>, vector<8x10xf32> -> vector<8x10xf32>
    %c0_15 = arith.constant 0 : index
    %c0_16 = arith.constant 0 : index
    %17 = vector.load %arg7[%c0_15, %c0_16] : memref<1x10xf32, #tpu.memory_space<vmem>>, vector<1x10xf32>
    %18 = vector.broadcast %17 : vector<1x10xf32> to vector<8x10xf32>
    %19 = arith.addf %16, %18 : vector<8x10xf32>
    %c0_17 = arith.constant 0 : index
    %c0_18 = arith.constant 0 : index
    %20 = vector.load %arg8[%c0_17, %c0_18] : memref<8x10xf32, #tpu.memory_space<vmem>>, vector<8x10xf32>
    tpu.vector_store %arg8[%c0_17, %c0_18], %19 {strides = array<i32>} : memref<8x10xf32, #tpu.memory_space<vmem>>, vector<8x10xf32>,
    return
  }
  func.func @transform_0(%arg0: i32) -> (i32, i32) {
    %c0_i32 = arith.constant 0 : i32
    %c0_i32_0 = arith.constant 0 : i32
    return %arg0, %c0_i32 : i32, i32
  }
  func.func @transform_1(%arg0: i32) -> (i32, i32) {
    %c0_i32 = arith.constant 0 : i32
    %c0_i32_0 = arith.constant 0 : i32
    %c0_i32_1 = arith.constant 0 : i32
    return %c0_i32, %c0_i32_0 : i32, i32
  }
  func.func @transform_2(%arg0: i32) -> (i32, i32) {
    %c0_i32 = arith.constant 0 : i32
    %c0_i32_0 = arith.constant 0 : i32
    %c0_i32_1 = arith.constant 0 : i32
    return %c0_i32, %c0_i32_0 : i32, i32
  }
  func.func @transform_3(%arg0: i32) -> (i32, i32) {
    %c0_i32 = arith.constant 0 : i32
    %c0_i32_0 = arith.constant 0 : i32
    %c0_i32_1 = arith.constant 0 : i32
    return %c0_i32, %c0_i32_0 : i32, i32
  }
  func.func @transform_4(%arg0: i32) -> (i32, i32) {
    %c0_i32 = arith.constant 0 : i32
    %c0_i32_0 = arith.constant 0 : i32
    %c0_i32_1 = arith.constant 0 : i32
    return %c0_i32, %c0_i32_0 : i32, i32
  }
  func.func @transform_5(%arg0: i32) -> (i32, i32) {
    %c0_i32 = arith.constant 0 : i32
    %c0_i32_0 = arith.constant 0 : i32
    %c0_i32_1 = arith.constant 0 : i32
    return %c0_i32, %c0_i32_0 : i32, i32
  }
  func.func @transform_6(%arg0: i32) -> (i32, i32) {
    %c0_i32 = arith.constant 0 : i32
    %c0_i32_0 = arith.constant 0 : i32
    %c0_i32_1 = arith.constant 0 : i32
    return %c0_i32, %c0_i32_0 : i32, i32
  }
  func.func @transform_7(%arg0: i32) -> (i32, i32) {
    %c0_i32 = arith.constant 0 : i32
    %c0_i32_0 = arith.constant 0 : i32
    return %arg0, %c0_i32 : i32, i32
  }
}

</mosaic_0001>

<bundles_post_ra>
// kernel: neural_net_forward.1
= control target key start
LH: loop header
LB: loop body
LE: loop exit
PB: predicated region body
PF: predicated region fallthrough
CT: control target
= control target key end

     0   :  { %12 = vsyncpa [#allocation3], 0  ;;  %s904_s0 = inlined_call_operand.vmem [shape: f32[16,32], index: 0, kind: input, shape index: {}]   ;;  %s905_s1 = inlined_call_operand.hbm [shape: f32[32,128], index: 1, kind: input, shape index: {}]   ;;  %s906_s2 = inlined_call_operand.vmem [shape: f32[1,128], index: 2, kind: input, shape index: {}]   ;;  %s907_s3 = inlined_call_operand.vmem [shape: f32[128,128], index: 3, kind: input, shape index: {}]   ;;  %s908_s4 = inlined_call_operand.vmem [shape: f32[1,128], index: 4, kind: input, shape index: {}]   ;;  %s909_s5 = inlined_call_operand.vmem [shape: f32[128,10], index: 5, kind: input, shape index: {}]   ;;  %s910_s6 = inlined_call_operand.vmem [shape: f32[1,10], index: 6, kind: input, shape index: {}]   ;;  %s911_s7 = inlined_call_operand.hbm [shape: f32[16,10], index: 7, kind: output, shape index: {}]  }
   0x1   :  { %13 = vsyncpa [#allocation4], 0 }
   0x2   :  { %15 = vsyncpa [#allocation4 + $0x1], 0  ;;  %s704_s24 = smov 0   ;;  %s706_s25 = smov 0  }
   0x3   :  { %s708_s26 = smov 0   ;;  %s710_s27 = smov 0  }
   0x4 LB: > { %s725_s28 = sadd.s32 4294967295, %s659_s27   ;;  %s495_s29 = sadd.s32 4294967294, %s659_s27   ;;  %s659_s27 = sphi %s710_s27, %s917_s27   ;;  %s655_s26 = sphi %s708_s26, %s916_s26   ;;  %s651_s25 = sphi %s706_s25, %s915_s25   ;;  %s647_s24 = sphi %s704_s24, %s914_s24  }
   0x5   : > { %s729_s30 = sadd.s32 1, %s659_s27   ;;  %s180_s8 = sadd.s32 1, %s655_s26 }
   0x6   : > { %s177_s9 = ssub.s32 %s659_s27, %s729_s30  ;;  %p190_p0 = scmp.ne.s32.totalorder %s655_s26, %s651_s25 }
   0x7   : > { %p178_p1 = scmp.eq.s32.totalorder %s177_s9, 0  ;;  %p191_p2 = scmp.eq.s32.totalorder %s725_s28, 1 }
   0x8   : > { %p196_p3 = scmp.ne.s32.totalorder %s651_s25, %s647_s24  ;;  %p197_p4 = scmp.eq.s32.totalorder %s495_s29, 1 }
   0x9   : > { %s740_s10 = scalar_select %p178_p1, %s655_s26, %s180_s8  }
   0xa   : > { %p742_p5 = por %p191_p2, %p190_p0  ;;  %p746_p6 = por %p197_p4, %p196_p3 }
   0xb   : > { %p496_p7 = scmp.ge.s32.totalorder %s659_s27, 1  ;;  %p204_p8 = scmp.lt.s32.totalorder %s659_s27, 3 }
   0xc   : > { %p522_p9 = scmp.eq.s32.totalorder %s725_s28, 0  ;;  %s215_s15 = sshll.u32 %s905_s1, 4  ;;  %s216_s15 = int_to_ptr.hbm [resolvable:$true] %s215_s15 }
   0xd   : > { %p205_p10 = pnand %p496_p7, %p204_p8  ;;  %s661_s16 = smov [#allocation2]  }
   0xe   : > { %s217_s17 = sshll.u32 %s661_s16, 4  ;;  %s662_s18 = smov 128   ;;  %s218_s17 = int_to_ptr.vmem [resolvable:$true] %s217_s17 }
   0xf   : > { %p514_p11 = pneg %p205_p10  ;;  %s663_s19 = smov 8  }
  0x10   : > { %255 = sbr.rel (%p205_p10) target bundleno = 427 (0x1ab), region = 48 }
  0x11   : > { %p515_p12 = pnand %p522_p9, %p514_p11 }
  0x13   : > { %517 = dma.hbm_to_vmem [thread:$0]  (!%p515_p12), %s216_s15, 512, %s218_s17, [#allocation3], %s662_s18, %s662_s18, %s663_s19  }
  0x15   : > { %638 = dma.done.wait (%p522_p9), [#allocation3], 512  }
  0x16   : > { %640 = vsyncadd (%p522_p9), [#allocation3], 4294966784  ;;  %p287_p13 = scmp.lt.s32.totalorder %s725_s28, 1  ;;  %v295_v0 = vld [vmem:[#allocation2 + $0x18] sm:$0xff]  ;;  %v294_v1 = vld [vmem:[#allocation2 + $0x10] sm:$0xff]  ;;  %vm300_vm0 = vcmask 261120  }
  0x17   : > { %316 = vmatpush.msra.mxu0 %v295_v0  ;;  %v340_v2 = vld [vmem:[%s907_s3 + $0x78] sm:$0xff]  ;;  %v293_v3 = vld [vmem:[#allocation2 + $0x8] sm:$0xff]  ;;  %v339_v4 = vld [vmem:[%s907_s3 + $0x70] sm:$0xff]  ;;  %s284_s23 = sand.u32 1, %s651_s25   ;;  %s505_s8 = sshll.u32 %s725_s28, 3  ;;  %vm406_vm1 = vcmask 80896  }
  0x18   : > { %s288_s20 = scalar_select %p287_p13, %s725_s28, 1  ;;  %345 = vmatpush.msra.mxu1 %v340_v2  ;;  %v338_v5 = vld [vmem:[%s907_s3 + $0x68] sm:$0xff]  ;;  %v292_v6 = vld [vmem:[#allocation2] sm:$0xff]  ;;  %v336_v9 = vld [vmem:[%s907_s3 + $0x58] sm:$0xff] }
  0x19   : > { %317 = vmatpush.msra.mxu0 %v294_v1  ;;  %v337_v8 = vld [vmem:[%s907_s3 + $0x60] sm:$0xff]  ;;  %v335_v10 = vld [vmem:[%s907_s3 + $0x50] sm:$0xff]  ;;  %v334_v11 = vld [vmem:[%s907_s3 + $0x48] sm:$0xff]  ;;  %s501_s29 = sshll.u32 %s284_s23, 3  ;;  %s419_s14 = scalar_lea.hbm %s911_s7, %s505_s8 }
  0x1a   : > { %s502_s21 = sshll.u32 %s288_s20, 3  ;;  %346 = vmatpush.msra.mxu1 %v339_v4  ;;  %v333_v12 = vld [vmem:[%s907_s3 + $0x40] sm:$0xff]  ;;  %v332_v13 = vld [vmem:[%s907_s3 + $0x38] sm:$0xff]  ;;  %v331_v14 = vld [vmem:[%s907_s3 + $0x30] sm:$0xff]  ;;  %s286_s17 = scalar_lea.vmem [#allocation5], %s501_s29 }
  0x1b   : > { %s290_s9 = scalar_lea.vmem %s904_s0, %s502_s21  ;;  %318 = vmatpush.msra.mxu0 %v293_v3  ;;  %v330_v15 = vld [vmem:[%s907_s3 + $0x28] sm:$0xff]  ;;  %v329_v16 = vld [vmem:[%s907_s3 + $0x20] sm:$0xff]  ;;  %v328_v17 = vld [vmem:[%s907_s3 + $0x18] sm:$0xff]  ;;  %s421_s18 = sshll.u32 %s286_s17, 4  ;;  %s422_s18 = int_to_ptr.vmem [resolvable:$true] %s421_s18 }
  0x1c   : > { %v291_v7 = vld [vmem:[%s290_s9] sm:$0xff]  ;;  %347 = vmatpush.msra.mxu1 %v338_v5  ;;  %v327_v18 = vld [vmem:[%s907_s3 + $0x10] sm:$0xff]  ;;  %v326_v19 = vld [vmem:[%s907_s3 + $0x8] sm:$0xff]  ;;  %s423_s19 = sshll.u32 %s419_s14, 4  ;;  %s409_s20 = scalar_lea.sflag [#allocation4], %s284_s23  ;;  %s424_s19 = int_to_ptr.hbm [resolvable:$true] %s423_s19 }
  0x1d   : > { %319 = vmatpush.msra.mxu0 %v292_v6  ;;  %v325_v20 = vld [vmem:[%s907_s3] sm:$0xff]  ;;  %v381_v21 = vld [vmem:[%s909_s5 + $0x78] sm:$0xff]  ;;  %v380_v22 = vld [vmem:[%s909_s5 + $0x70] sm:$0xff]  ;;  %s607_s28 = sshra.s32 %s424_s19, 4  ;;  %s613_s29 = scalar_lea.hbm %s911_s7, 16  ;;  %s608_s28 = int_to_ptr.hbm [resolvable:$true] %s607_s28 }
  0x1e   : > { %503 = vmatmul.msk.f32.vlgmr.msra.gmra.mxu0 %vm300_vm0, %v291_v7  ;;  %348 = vmatpush.msra.mxu1 %v337_v8  ;;  %v379_v23 = vld [vmem:[%s909_s5 + $0x68] sm:$0xff]  ;;  %v378_v24 = vld [vmem:[%s909_s5 + $0x60] sm:$0xff]  ;;  %v377_v25 = vld [vmem:[%s909_s5 + $0x58] sm:$0xff]  ;;  %s609_s21 = scalar_lea.hbm %s608_s28, 8  ;;  %p614_p3 = scmp.lt.s32.totalorder %s608_s28, %s911_s7 }
  0x1f   : > { %386 = vmatpush.msra.mxu2 %v381_v21  ;;  %v376_v26 = vld [vmem:[%s909_s5 + $0x50] sm:$0xff]  ;;  %v375_v27 = vld [vmem:[%s909_s5 + $0x48] sm:$0xff]  ;;  %v374_v28 = vld [vmem:[%s909_s5 + $0x40] sm:$0xff]  ;;  %p610_p0 = scmp.ne.s32.totalorder %s608_s28, %s609_s21  ;;  %p615_p4 = scmp.lt.s32.totalorder %s613_s29, %s609_s21 }
  0x20   : > { %349 = vmatpush.msra.mxu1 %v336_v9  ;;  %v373_v29 = vld [vmem:[%s909_s5 + $0x38] sm:$0xff]  ;;  %v372_v30 = vld [vmem:[%s909_s5 + $0x30] sm:$0xff]  ;;  %v371_v31 = vld [vmem:[%s909_s5 + $0x28] sm:$0xff] }
  0x21   : > { %387 = vmatpush.msra.mxu2 %v380_v22  ;;  %v370_v32 = vld [vmem:[%s909_s5 + $0x20] sm:$0xff]  ;;  %v369_v33 = vld [vmem:[%s909_s5 + $0x18] sm:$0xff]  ;;  %v368_v38 = vld [vmem:[%s909_s5 + $0x10] sm:$0xff]  ;;  %p611_p1 = pnand %p610_p0, %p742_p5  ;;  %p616_p7 = por %p615_p4, %p614_p3 }
  0x22   : > { %350 = vmatpush.msra.mxu1 %v335_v10  ;;  %v560_v34 = vld [vmem:[%s906_s2] ss:$0 sm:$0xff]  ;;  %v367_v39 = vld [vmem:[%s909_s5 + $0x8] sm:$0xff] }
  0x23   : > { %388 = vmatpush.msra.mxu2 %v379_v23  ;;  %v366_v40 = vld [vmem:[%s909_s5] sm:$0xff]  ;;  %p612_p2 = pneg %p611_p1 }
  0x24   : > { %351 = vmatpush.msra.mxu1 %v334_v11  ;;  %v561_v41 = vld [vmem:[%s908_s4] ss:$0 sm:$0xff] }
  0x25   : > { %389 = vmatpush.msra.mxu2 %v378_v24  ;;  %v562_v45 = vld [vmem:[%s910_s6] ss:$0 sm:$0xff]  ;;  %p617_p8 = pnand %p616_p7, %p612_p2 }
  0x26   : > { %352 = vmatpush.msra.mxu1 %v333_v12 }
  0x27   : > { %390 = vmatpush.msra.mxu2 %v377_v25 }
  0x28   : > { %353 = vmatpush.msra.mxu1 %v332_v13 }
  0x29   : > { %391 = vmatpush.msra.mxu2 %v376_v26 }
  0x2a   : > { %354 = vmatpush.msra.mxu1 %v331_v14 }
  0x2b   : > { %392 = vmatpush.msra.mxu2 %v375_v27 }
  0x2c   : > { %355 = vmatpush.msra.mxu1 %v330_v15 }
  0x2d   : > { %393 = vmatpush.msra.mxu2 %v374_v28 }
  0x2e   : > { %356 = vmatpush.msra.mxu1 %v329_v16 }
  0x2f   : > { %394 = vmatpush.msra.mxu2 %v373_v29 }
  0x30   : > { %357 = vmatpush.msra.mxu1 %v328_v17 }
  0x31   : > { %395 = vmatpush.msra.mxu2 %v372_v30 }
  0x32   : > { %358 = vmatpush.msra.mxu1 %v327_v18 }
  0x33   : > { %396 = vmatpush.msra.mxu2 %v371_v31 }
  0x34   : > { %359 = vmatpush.msra.mxu1 %v326_v19 }
  0x35   : > { %397 = vmatpush.msra.mxu2 %v370_v32 }
  0x36   : > { %360 = vmatpush.msra.mxu1 %v325_v20 }
  0x37   : > { %398 = vmatpush.msra.mxu2 %v369_v33 }
  0x39   : > { %399 = vmatpush.msra.mxu2 %v368_v38 }
  0x3b   : > { %400 = vmatpush.msra.mxu2 %v367_v39 }
  0x3d   : > { %401 = vmatpush.msra.mxu2 %v366_v40 }
  0x9b   : > { %v321_v35 = vpop.f32.mrf.mxu0 }
  0x9c   : > { %v322_v36 = vadd.f32 %v560_v34, %v321_v35 }
  0x9e   : > { %v324_v37 = vmax.f32 %v322_v36, 0.0 }
  0xa0   : > { %361 = vmatmul.f32.vlgmr.msra.gmra.mxu1 %v324_v37 }
 0x11d   : > { %v362_v42 = vpop.f32.mrf.mxu1 }
 0x11e   : > { %v363_v43 = vadd.f32 %v561_v41, %v362_v42 }
 0x120   : > { %v365_v44 = vmax.f32 %v363_v43, 0.0 }
 0x122   : > { %402 = vmatmul.f32.vlgmr.msra.gmra.mxu2 %v365_v44 }
 0x1a5   : > { %v403_v46 = vpop.f32.mrf.mxu2 }
 0x1a6   : > { %v404_v47 = vadd.f32 %v562_v45, %v403_v46 }
 0x1a8   : > { %407 = vst.msk [vmem:[%s286_s17] sm:$0xff] %vm406_vm1, %v404_v47 }
 0x1a9   : > { %620 = shalt.err (!%p617_p8)
}
 0x1aa   : > { %512 = dma.vmem_to_hbm [thread:$0]  (%p742_p5), %s422_s18, 128, %s424_s19, %s409_s20  }
 0x1ab PF: > { %p524_p9 = scmp.ge.s32.totalorder %s659_s27, 2  ;;  %s435_s23 = sand.u32 1, %s647_s24  }
 0x1ac   : > { %s436_s14 = scalar_lea.sflag [#allocation4], %s435_s23 }
 0x1ad   : > { %p519_p10 = pnand %p524_p9, %p746_p6 }
 0x1af   : > { %p520_p11 = pneg %p519_p10 }
 0x1b1   : > { %642 = dma.done.wait (%p520_p11), %s436_s14, 128  }
 0x1b2   : > { %644 = vsyncadd (%p520_p11), %s436_s14, 4294967168  ;;  %p18_p12 = scmp.ge.s32.totalorder %s729_s30, 4   ;;  %s914_s24 = smov %s651_s25 }
 0x1b3   : > { %s915_s25 = smov %s655_s26  ;;  %s916_s26 = smov %s740_s10 }
 0x1b4   : > { %s917_s27 = smov %s729_s30  ;;  %20 = sbr.rel (!%p18_p12) target bundleno = 4 (0x4), region = 88 }
 0x1b9   :  { %442 = vsyncpa [#allocation3], 1 }
 0x1ba   :  { %444 = vsyncpa [#allocation3 + $0x1], 1 }
 0x1bb   :  { %445 = vsyncpa [#allocation4], 1 }
 0x1bc   :  { %447 = vsyncpa [#allocation4 + $0x1], 1 }

</bundles_post_ra>
